<compile_context>
chip_gen: v6e
topology: v6e:2x2x1
jax: 0.10.0
libtpu: 0.0.40
codegen_flags: <defaults>
</compile_context>

<pallas_src>
import functools

import jax
import jax.numpy as jnp
from jax.experimental import pallas as pl
from jax.experimental.pallas import tpu as pltpu


def _ovr_loss_kernel(x_ref, oh_ref, p_ref, partial_ref, *, n_elems):
    # x_ref:       (tile_r, 384) logits, classes interleaved along lanes
    # oh_ref:      (tile_r, 384) int8 one-hot in the same layout
    # p_ref:       (tile_r, 384) sigmoid output tile (input dtype)
    # partial_ref: (8, 384) f32 block; row 0 carries this tile's per-lane BCE sums.
    x = x_ref[...].astype(jnp.float32)
    tile_r, w = x.shape

    # sigmoid probabilities (second output of the module)
    p = jax.nn.sigmoid(x)
    p_ref[...] = p.astype(p_ref.dtype)

    # F.binary_cross_entropy clamps the log terms at -100 (PyTorch behaviour).
    log_p = jnp.maximum(jnp.log(p), -100.0)
    log_1mp = jnp.maximum(jnp.log(1.0 - p), -100.0)

    # y in {0,1} -> BCE reduces to a select between the two log terms.
    is_pos = oh_ref[...] != 0
    bce = -jnp.where(is_pos, log_p, log_1mp)

    # Neutralise padded lanes / garbage columns of a partial last block.
    row_idx = pl.program_id(0) * tile_r + jax.lax.broadcasted_iota(
        jnp.int32, (tile_r, w), 0)
    lane_idx = jax.lax.broadcasted_iota(jnp.int32, (tile_r, w), 1)
    valid = row_idx * w + lane_idx < n_elems
    bce = jnp.where(valid, bce, 0.0)

    # Sublane-only reduce; leave the cross-lane finish to XLA outside the kernel.
    col_sum = jnp.sum(bce, axis=0, keepdims=True)          # (1, w)
    out_row = jax.lax.broadcasted_iota(jnp.int32, (8, w), 0)
    partial_ref[...] = jnp.where(out_row == 0, col_sum, 0.0)


def weighted_ovr_loss(inputs, targets, *, tile_rows=1024):
    """inputs: (N, 3) float logits (f32 or bf16); targets: (N,) int labels in {0,1,2}."""
    N, C = inputs.shape
    W = 128 * C                       # 384 lanes: 128 samples x C interleaved classes
    rows = pl.cdiv(N, 128)            # lane-dense row count
    n_elems = N * C
    pad = rows * W - n_elems          # pad only to a 128-sample boundary

    # Free (metadata) reshape of the natural (N, 3) layout into a lane-dense slab.
    x_flat = inputs.reshape(-1)
    if pad:
        x_flat = jnp.pad(x_flat, (0, pad))
    x2 = x_flat.reshape(rows, W)

    # int8 one-hot in the same interleaved layout (~1 B / element of input traffic).
    classes = jnp.arange(C, dtype=jnp.int32)
    onehot = (targets.astype(jnp.int32)[:, None] == classes[None, :]).astype(jnp.int8)
    oh_flat = onehot.reshape(-1)
    if pad:
        oh_flat = jnp.pad(oh_flat, (0, pad))
    oh2 = oh_flat.reshape(rows, W)

    # Tile the row axis: big tiles to amortize per-step overhead, but keep >= ~4
    # grid steps (2-TC split) and stay well inside VMEM on all chips.
    if rows <= 32:
        tile_r = rows                 # single block; full-dim satisfies tiling rules
    else:
        target = min(tile_rows, pl.cdiv(rows, 4))
        tile_r = max(8, (target // 8) * 8)
    num_tiles = pl.cdiv(rows, tile_r)

    kernel = functools.partial(_ovr_loss_kernel, n_elems=n_elems)

    elem = rows * W
    in_bytes = jnp.dtype(inputs.dtype).itemsize
    cost = pl.CostEstimate(
        flops=8 * elem,
        transcendentals=3 * elem,                 # sigmoid + log(p) + log(1-p)
        bytes_accessed=(elem * in_bytes           # logits in
                        + elem * 1                # int8 one-hot in
                        + elem * in_bytes         # p out (input dtype)
                        + num_tiles * 8 * W * 4), # partial sums out
    )

    p2, partials = pl.pallas_call(
        kernel,
        grid=(num_tiles,),
        in_specs=[
            pl.BlockSpec((tile_r, W), lambda i: (i, 0)),
            pl.BlockSpec((tile_r, W), lambda i: (i, 0)),
        ],
        out_specs=(
            pl.BlockSpec((tile_r, W), lambda i: (i, 0)),
            pl.BlockSpec((8, W), lambda i: (i, 0)),
        ),
        out_shape=(
            jax.ShapeDtypeStruct((rows, W), inputs.dtype),
            jax.ShapeDtypeStruct((num_tiles * 8, W), jnp.float32),
        ),
        compiler_params=pltpu.CompilerParams(
            dimension_semantics=("parallel",),
            vmem_limit_bytes=32 * 1024 * 1024,
        ),
        cost_estimate=cost,
    )(x2, oh2)

    loss = jnp.sum(partials) / jnp.float32(n_elems)

    # Back to the module's (N, 3) layout; free when N % 128 == 0.
    p_flat = p2.reshape(-1)
    if pad:
        p_flat = p_flat[:n_elems]
    batch_out = p_flat.reshape(N, C)
    return loss, batch_out


def _reference(inputs, targets):
    # pure-JAX reference mirroring the PyTorch module
    p = jax.nn.sigmoid(inputs.astype(jnp.float32))
    y = jax.nn.one_hot(targets, 3, dtype=jnp.float32)
    log_p = jnp.maximum(jnp.log(p), -100.0)
    log_1mp = jnp.maximum(jnp.log(1.0 - p), -100.0)
    bce = -(y * log_p + (1.0 - y) * log_1mp)
    per_class = jnp.mean(bce, axis=0)
    return jnp.sum(per_class) / 3.0, p.astype(inputs.dtype)


if __name__ == "__main__":
    key = jax.random.PRNGKey(0)
    fn = jax.jit(weighted_ovr_loss)

    ok = True
    # Case 1: N not a multiple of 128 (exercises padding + partial-lane masking).
    # Case 2: N a multiple of 128 (pure metadata reshapes, no padding path).
    for N in (200, 256):
        k_x, k_t = jax.random.split(jax.random.fold_in(key, N))
        inputs = jax.random.normal(k_x, (N, 3), dtype=jnp.float32)
        targets = jax.random.randint(k_t, (N,), 0, 3, dtype=jnp.int32)

        loss, batch_out = fn(inputs, targets)
        jax.block_until_ready((loss, batch_out))

        ref_loss, ref_out = _reference(inputs, targets)
        ok &= bool(jnp.allclose(loss, ref_loss, atol=1e-5, rtol=1e-5))
        ok &= bool(jnp.allclose(batch_out, ref_out, atol=1e-5, rtol=1e-5))

    assert ok
    print("KERNEL_OK")
</pallas_src>

<mosaic_0001>
module attributes {stable_mosaic.version = 11 : i64} {
  func.func @_ovr_loss_kernel(%arg0: i32, %arg1: memref<2x384xf32, #tpu.memory_space<vmem>>, %arg2: memref<2x384xi8, #tpu.memory_space<vmem>>, %arg3: memref<2x384xf32, #tpu.memory_space<vmem>>, %arg4: memref<8x384xf32, #tpu.memory_space<vmem>>) attributes {dimension_semantics = [#tpu.dimension_semantics<parallel>], iteration_bounds = array<i64: 1>, scalar_prefetch = 0 : i64, scratch_operands = 0 : i64, tpu.core_type = #tpu.core_type<tc>, window_params = [{transform_indices = @transform_0, window_bounds = array<i64: 2, 384>}, {transform_indices = @transform_1, window_bounds = array<i64: 2, 384>}, {transform_indices = @transform_2, window_bounds = array<i64: 2, 384>}, {transform_indices = @transform_3, window_bounds = array<i64: 8, 384>}]} {
    %c0 = arith.constant 0 : index
    %c0_0 = arith.constant 0 : index
    %0 = vector.load %arg1[%c0, %c0_0] : memref<2x384xf32, #tpu.memory_space<vmem>>, vector<2x384xf32>
    %1 = arith.negf %0 : vector<2x384xf32>
    %2 = math.exp %1 : vector<2x384xf32>
    %cst = arith.constant 1.000000e+00 : f32
    %3 = vector.broadcast %cst : f32 to vector<2x384xf32>
    %4 = arith.addf %3, %2 : vector<2x384xf32>
    %5 = arith.divf %3, %4 : vector<2x384xf32>
    %c0_1 = arith.constant 0 : index
    %c0_2 = arith.constant 0 : index
    %6 = vector.load %arg3[%c0_1, %c0_2] : memref<2x384xf32, #tpu.memory_space<vmem>>, vector<2x384xf32>
    tpu.vector_store %arg3[%c0_1, %c0_2], %5 {strides = array<i32>} : memref<2x384xf32, #tpu.memory_space<vmem>>, vector<2x384xf32>,
    %7 = math.log %5 : vector<2x384xf32>
    %cst_3 = arith.constant -1.000000e+02 : f32
    %8 = vector.broadcast %cst_3 : f32 to vector<2x384xf32>
    %9 = arith.maximumf %7, %8 : vector<2x384xf32>
    %cst_4 = arith.constant 1.000000e+00 : f32
    %10 = vector.broadcast %cst_4 : f32 to vector<2x384xf32>
    %11 = arith.subf %10, %5 : vector<2x384xf32>
    %12 = math.log %11 : vector<2x384xf32>
    %cst_5 = arith.constant -1.000000e+02 : f32
    %13 = vector.broadcast %cst_5 : f32 to vector<2x384xf32>
    %14 = arith.maximumf %12, %13 : vector<2x384xf32>
    %c0_6 = arith.constant 0 : index
    %c0_7 = arith.constant 0 : index
    %15 = vector.load %arg2[%c0_6, %c0_7] : memref<2x384xi8, #tpu.memory_space<vmem>>, vector<2x384xi8>
    %c0_i8 = arith.constant 0 : i8
    %16 = vector.broadcast %c0_i8 : i8 to vector<2x384xi8>
    %17 = arith.cmpi ne, %15, %16 : vector<2x384xi8>
    %18 = arith.select %17, %9, %14 : vector<2x384xi1>, vector<2x384xf32>
    %cst_8 = arith.constant 0.000000e+00 : f32
    %19 = vector.broadcast %cst_8 : f32 to vector<2x384xf32>
    %20 = arith.subf %19, %18 : vector<2x384xf32>
    %c2_i32 = arith.constant 2 : i32
    %21 = arith.muli %arg0, %c2_i32 : i32
    %22 = tpu.iota {dimensions = array<i32: 0>} : vector<2x384xi32>
    %23 = vector.broadcast %21 : i32 to vector<2x384xi32>
    %24 = arith.addi %23, %22 : vector<2x384xi32>
    %25 = tpu.iota {dimensions = array<i32: 1>} : vector<2x384xi32>
    %c384_i32 = arith.constant 384 : i32
    %26 = vector.broadcast %c384_i32 : i32 to vector<2x384xi32>
    %27 = arith.muli %24, %26 : vector<2x384xi32>
    %28 = arith.addi %27, %25 : vector<2x384xi32>
    %c600_i32 = arith.constant 600 : i32
    %29 = vector.broadcast %c600_i32 : i32 to vector<2x384xi32>
    %30 = arith.cmpi slt, %28, %29 : vector<2x384xi32>
    %cst_9 = arith.constant 0.000000e+00 : f32
    %31 = vector.broadcast %cst_9 : f32 to vector<2x384xf32>
    %32 = arith.select %30, %20, %31 : vector<2x384xi1>, vector<2x384xf32>
    %cst_10 = arith.constant dense<0.000000e+00> : vector<384xf32>
    %33 = vector.multi_reduction <add>, %32, %cst_10 [0] : vector<2x384xf32> to vector<384xf32>
    %34 = vector.shape_cast %33 : vector<384xf32> to vector<1x384xf32>
    %35 = tpu.iota {dimensions = array<i32: 0>} : vector<8x384xi32>
    %c0_i32 = arith.constant 0 : i32
    %36 = vector.broadcast %c0_i32 : i32 to vector<8x384xi32>
    %37 = arith.cmpi eq, %35, %36 : vector<8x384xi32>
    %cst_11 = arith.constant 0.000000e+00 : f32
    %38 = vector.shape_cast %34 : vector<1x384xf32> to vector<1x384xf32>
    %39 = vector.broadcast %38 : vector<1x384xf32> to vector<8x384xf32>
    %40 = vector.broadcast %cst_11 : f32 to vector<8x384xf32>
    %41 = arith.select %37, %39, %40 : vector<8x384xi1>, vector<8x384xf32>
    %c0_12 = arith.constant 0 : index
    %c0_13 = arith.constant 0 : index
    %42 = vector.load %arg4[%c0_12, %c0_13] : memref<8x384xf32, #tpu.memory_space<vmem>>, vector<8x384xf32>
    tpu.vector_store %arg4[%c0_12, %c0_13], %41 {strides = array<i32>} : memref<8x384xf32, #tpu.memory_space<vmem>>, vector<8x384xf32>,
    return
  }
  func.func @transform_0(%arg0: i32) -> (i32, i32) {
    %c0_i32 = arith.constant 0 : i32
    %c0_i32_0 = arith.constant 0 : i32
    return %arg0, %c0_i32 : i32, i32
  }
  func.func @transform_1(%arg0: i32) -> (i32, i32) {
    %c0_i32 = arith.constant 0 : i32
    %c0_i32_0 = arith.constant 0 : i32
    return %arg0, %c0_i32 : i32, i32
  }
  func.func @transform_2(%arg0: i32) -> (i32, i32) {
    %c0_i32 = arith.constant 0 : i32
    %c0_i32_0 = arith.constant 0 : i32
    return %arg0, %c0_i32 : i32, i32
  }
  func.func @transform_3(%arg0: i32) -> (i32, i32) {
    %c0_i32 = arith.constant 0 : i32
    %c0_i32_0 = arith.constant 0 : i32
    return %arg0, %c0_i32 : i32, i32
  }
}

</mosaic_0001>

<bundles_post_ra>
// kernel: weighted_ovr_loss.1
= control target key start
LH: loop header
LB: loop body
LE: loop exit
PB: predicated region body
PF: predicated region fallthrough
CT: control target
= control target key end

     0   :  { %v144_v5 = vmov 0   ;;  %v145_v7 = vmov 1983009808   ;;  %v42_v9 = vlaneseq  ;;  %vm96_vm5 = vcmask 1041408   ;;  %s189_s0 = inlined_call_operand.vmem [shape: f32[2,384], index: 0, kind: input, shape index: {}]   ;;  %s190_s1 = inlined_call_operand.vmem [shape: s8[2,384], index: 1, kind: input, shape index: {}]   ;;  %s191_s2 = inlined_call_operand.vmem [shape: f32[2,384], index: 2, kind: output, shape index: {0}]   ;;  %s192_s3 = inlined_call_operand.vmem [shape: f32[8,384], index: 3, kind: output, shape index: {1}]  }
   0x1   :  { %v15_v0 = vld [vmem:[%s189_s0] sm:$0x3f]  ;;  %v40_v8 = vunpack.c.l.s4 %v145_v7 }
   0x2   :  { %v133_v1 = vmul.f32 -1.442695, %v15_v0  ;;  %v30_v4 = vld [vmem:[%s190_s1] sm:$0x7]  ;;  %v175_v15 = vshrl.u32 %v42_v9, 7  ;;  %v63_v21 = vand.u32 127, %v42_v9 }
   0x3   :  { %vm31_vm0 = vnez %v30_v4  ;;  %v41_v14 = vunpack.c.0.s8 %v40_v8 }
   0x4   :  { %136 = vpow2.f32 %v133_v1  ;;  %v32_v6 = vsel %vm31_vm0, 16843009, %v144_v5  ;;  %v66_v25 = vmul.u32 384, %v175_v15  ;;  %v64_v29 = vadd.s32 128, %v63_v21 }
   0x5   :  { %v33_v11 = vunpack.c.0.s8 %v32_v6  ;;  %v34_v12 = vunpack.c.1.s8 %v32_v6  ;;  %v44_v16 = vsub.s32 %v41_v14, %v175_v15  ;;  %v65_v30 = vadd.s32 256, %v63_v21 }
   0x6   :  { %v67_v32 = vadd.s32 %v66_v25, %v63_v21  ;;  %v68_v34 = vadd.s32 %v66_v25, %v64_v29  ;;  %vm118_vm8 = vcmp.eq.s32.totalorder %v175_v15, 0 }
   0x7   :  { %vm35_vm1 = vcmp.ne.s32.totalorder %v33_v11, 0  ;;  %vm36_vm2 = vcmp.ne.s32.totalorder %v34_v12, 0  ;;  %v69_v35 = vadd.s32 %v66_v25, %v65_v30 }
   0x8   :  { %v37_v17 = vsel %vm35_vm1, 1, %v144_v5  ;;  %v38_v18 = vsel %vm36_vm2, 1, %v144_v5  ;;  %vm70_vm4 = vcmp.lt.s32.totalorder %v67_v32, 600  ;;  %vm71_vm6 = vcmp.lt.s32.totalorder %v68_v34, 600 }
   0x9   :  { %v45_v19 = vrot.slane %v37_v17, %v44_v16  ;;  %v52_v20 = vrot.slane %v38_v18, %v44_v16  ;;  %vm72_vm7 = vcmp.lt.s32.totalorder %v69_v35, 600 }
   0xb   :  { %v53_v23 = vcombine.low %v45_v19, %v52_v20 }
   0xd   :  { %vm54_vm3 = vcmp.ne.s32.totalorder %v53_v23, 0 }
  0x11   :  { %v137_v2 = vpop.eup %136 }
  0x12   :  { %v19_v3 = vadd.f32 1.0, %v137_v2 }
  0x14   :  { %138 = vrcp.f32 %v19_v3 }
  0x21   :  { %v139_v10 = vpop.eup %138 }
  0x22   :  { %22 = vst [vmem:[%s191_s2] sm:$0x3f] %v139_v10  ;;  %140 = vlog2.f32 %v139_v10  ;;  %v26_v13 = vsub.f32 1.0, %v139_v10 }
  0x24   :  { %142 = vlog2.f32 %v26_v13 }
  0x2f   :  { %v141_v22 = vpop.eup %140 }
  0x30   :  { %v24_v24 = vmul.f32 0.6931472, %v141_v22 }
  0x31   :  { %v143_v26 = vpop.eup %142 }
  0x32   :  { %v25_v27 = vmax.f32 %v24_v24, -100.0  ;;  %v28_v28 = vmul.f32 0.6931472, %v143_v26 }
  0x34   :  { %v29_v31 = vmax.f32 %v28_v28, -100.0 }
  0x36   :  { %v55_v33 = vsel %vm54_vm3, %v25_v27, %v29_v31 }
  0x37   :  { %v56_v36 = vsub.f32 0.0, %v55_v33 }
  0x39   :  { %v81_v37 = vrot.slane %v56_v36, %v44_v16  ;;  %v74_v38 = vcombine.high %v56_v36, %v56_v36 }
  0x3b   :  { %v93_v39 = vsel %vm70_vm4, %v81_v37, 0.0  ;;  %v89_v40 = vcombine.high %v81_v37, %v81_v37  ;;  %v88_v41 = vrot.slane %v74_v38, %v44_v16 }
  0x3c   :  { %v97_v42 = vsel %vm96_vm5, %v93_v39, 0.0 }
  0x3d   :  { %v98_v43 = vrot.slane %v97_v42, 4  ;;  %v94_v44 = vsel %vm71_vm6, %v89_v40, 0.0  ;;  %v95_v45 = vsel %vm72_vm7, %v88_v41, 0.0 }
  0x3e   :  { %v104_v46 = vsel %vm96_vm5, %v94_v44, 0.0  ;;  %v111_v47 = vsel %vm96_vm5, %v95_v45, 0.0 }
  0x3f   :  { %v99_v48 = vadd.f32 %v98_v43, %v97_v42  ;;  %v105_v49 = vrot.slane %v104_v46, 4  ;;  %v112_v50 = vrot.slane %v111_v47, 4 }
  0x41   :  { %v100_v51 = vrot.slane %v99_v48, 2  ;;  %v106_v52 = vadd.f32 %v105_v49, %v104_v46  ;;  %v113_v53 = vadd.f32 %v112_v50, %v111_v47 }
  0x43   :  { %v101_v54 = vadd.f32 %v100_v51, %v99_v48  ;;  %v107_v55 = vrot.slane %v106_v52, 2  ;;  %v114_v56 = vrot.slane %v113_v53, 2 }
  0x45   :  { %v102_v57 = vrot.slane %v101_v54, 1  ;;  %v108_v58 = vadd.f32 %v107_v55, %v106_v52  ;;  %v115_v59 = vadd.f32 %v114_v56, %v113_v53 }
  0x47   :  { %v103_v60 = vadd.f32 %v102_v57, %v101_v54  ;;  %v109_v61 = vrot.slane %v108_v58, 1  ;;  %v116_v62 = vrot.slane %v115_v59, 1 }
  0x49   :  { %v119_v63 = vsel %vm118_vm8, %v103_v60, 0.0  ;;  %v110_v0 = vadd.f32 %v109_v61, %v108_v58  ;;  %v117_v1 = vadd.f32 %v116_v62, %v115_v59 }
  0x4a   :  { %122 = vst [vmem:[%s192_s3] sm:$0xff] %v119_v63 }
  0x4b   :  { %v120_v2 = vsel %vm118_vm8, %v110_v0, 0.0  ;;  %v121_v3 = vsel %vm118_vm8, %v117_v1, 0.0 }
  0x4c   :  { %123 = vst [vmem:[%s192_s3 + $0x8] sm:$0xff] %v120_v2  ;;  %124 = vst [vmem:[%s192_s3 + $0x10] sm:$0xff] %v121_v3 }

</bundles_post_ra>
